<compile_context>
chip_gen: v6e
topology: v6e:2x2x1
jax: 0.10.0
libtpu: 0.0.40
codegen_flags: <defaults>
</compile_context>

<pallas_src>
import jax
import jax.numpy as jnp
from jax.experimental import pallas as pl
from jax.experimental.pallas import tpu as pltpu


def _divisors(n):
    return [d for d in range(1, n + 1) if n % d == 0]


def _halo_rows(row_tile, W, kH):
    """Smallest row count covering the (kH-1)-row overlap whose flattened
    width keeps the halo BlockSpec lane-aligned; falls back to the tile."""
    opts = [d for d in _divisors(row_tile) if d >= kH and (d * W) % 128 == 0]
    return min(opts) if opts else row_tile


def _pick_row_tile(H, W, C_in, C_out, kH, kW, n_batch, budget_bytes):
    """Largest output-row tile TH with TH | H and a lane-aligned (TH*W) block
    whose per-step working set fits the VMEM budget."""
    def step_bytes(th):
        hr = _halo_rows(th, W, kH)
        x_blk = 4 * C_in * (th + hr) * W            # f32 main + halo window
        o_blk = 4 * C_out * th * W                  # f32 output tile
        w_blk = 4 * kH * kW * C_out * C_in          # resident weight taps
        tmp = x_blk + 4 * (C_in + C_out) * th * W   # concat / shift / acc temps
        return 2 * (x_blk + o_blk + w_blk) + tmp    # 2x: double-buffered DMA

    cands = [d for d in _divisors(H)
             if d >= kH and (d == H or (d * W) % 128 == 0)]
    fitting = [d for d in cands if step_bytes(d) <= budget_bytes]
    pool = fitting if fitting else cands[:1]        # best effort if nothing fits
    if n_batch < 2 and any(d < H for d in pool):
        # Keep >= 2 grid steps so both v7x TensorCores get work.
        pool = [d for d in pool if d < H]
    return max(pool)


def norm_conv2d(x, v, g, bias, *, row_tile=None, out_dtype=None,
                vmem_budget_bytes=32 * 1024 * 1024):
    """Forward of NormConv2d = weight_norm(nn.Conv2d, dim=0) with the Conv2d
    defaults NormConv2d relies on (stride=1, padding=0, dilation=1, groups=1).
    # TODO(synk): non-default stride / padding / dilation / groups.

    x: (N, C_in, H, W); v: (C_out, C_in, kH, kW); g, bias: (C_out,).
    Returns (N, C_out, H - kH + 1, W - kW + 1) in out_dtype (default x.dtype).
    """
    N, C_in, H, W = x.shape
    C_out, C_in_w, kH, kW = v.shape
    assert C_in_w == C_in and kH <= H and kW <= W
    Ho, Wo = H - kH + 1, W - kW + 1
    P = H * W
    out_dtype = out_dtype or x.dtype

    # ---- weight-norm scale: tiny XLA op, folded into the conv epilogue ----
    v32 = v.astype(jnp.float32)
    scale = (g.astype(jnp.float32)
             * jax.lax.rsqrt(jnp.sum(v32 * v32, axis=(1, 2, 3)))
             ).reshape(C_out, 1)
    bias2 = bias.astype(jnp.float32).reshape(C_out, 1)
    # Taps laid out (kH*kW, C_out, C_in): one (C_out, C_in) @ (C_in, TP) MXU
    # matmul per tap.  The weight is tiny — this transpose is free next to
    # activation traffic.
    w_taps = jnp.transpose(v32.reshape(C_out, C_in, kH * kW), (2, 0, 1))

    # ---- activations: native layout; collapsing (H, W) is a bitcast --------
    xf = x.reshape(N, C_in, P)

    if row_tile is None:
        TH = _pick_row_tile(H, W, C_in, C_out, kH, kW, N, vmem_budget_bytes)
    else:
        TH = int(row_tile)
        assert H % TH == 0 and TH >= kH and (TH == H or (TH * W) % 128 == 0)
    TH_HALO = _halo_rows(TH, W, kH)
    n_t = H // TH
    TP = TH * W                      # lane width of x / output blocks
    HP = TH_HALO * W                 # lane width of the halo block
    m_halo = TH // TH_HALO
    last_halo = H // TH_HALO - 1
    # TODO(synk): add a C_in reduction grid axis (arbitrary, f32 accumulator)
    # for channel counts too large to keep the whole window resident.

    def kernel(w_ref, s_ref, b_ref, x_ref, xh_ref, o_ref):
        # Row window = this tile's rows plus the first TH_HALO rows of the
        # next tile (clamped at the image edge: the clamped case only feeds
        # output rows >= Ho, which the wrapper slices off).
        x_win = jnp.concatenate([x_ref[0], xh_ref[0]], axis=-1)
        acc = None
        for i in range(kH):
            for j in range(kW):
                # In-VMEM "im2col": tap (i, j) is a lane-offset slice of the
                # flattened window — x never touches HBM more than once.
                xs = x_win[:, i * W + j: i * W + j + TP]
                part = jnp.dot(w_ref[i * kW + j], xs,
                               preferred_element_type=jnp.float32)
                acc = part if acc is None else acc + part
        # Epilogue: weight-norm scale + bias.  (s*W)x + b == s*(Wx) + b.
        o_ref[0] = (acc * s_ref[...] + b_ref[...]).astype(o_ref.dtype)

    out_shape = jax.ShapeDtypeStruct((N, C_out, P), out_dtype)
    # 48 MiB default: above v5e/v6e scoped defaults, safely under v7x's
    # 64 MiB physical VMEM; raise vmem_budget_bytes on 128 MiB parts.
    vmem_limit = int(min(max(vmem_budget_bytes + (16 << 20), 32 << 20),
                         100 << 20))

    def call(single_buffer_consts):
        const_kw = ({"pipeline_mode": pl.Buffered(1)}
                    if single_buffer_consts else {})
        in_specs = [
            # Constant-index operands: VMEM-resident across the whole grid.
            pl.BlockSpec((kH * kW, C_out, C_in), lambda n, t: (0, 0, 0),
                         **const_kw),
            pl.BlockSpec((C_out, 1), lambda n, t: (0, 0), **const_kw),
            pl.BlockSpec((C_out, 1), lambda n, t: (0, 0), **const_kw),
            # Row tile of x ...
            pl.BlockSpec((1, C_in, TP), lambda n, t: (n, 0, t)),
            # ... and its halo (first rows of the next tile, edge-clamped).
            pl.BlockSpec((1, C_in, HP),
                         lambda n, t: (n, 0, jnp.minimum((t + 1) * m_halo,
                                                         last_halo))),
        ]
        return pl.pallas_call(
            kernel,
            out_shape=out_shape,
            grid=(N, n_t),
            in_specs=in_specs,
            out_specs=pl.BlockSpec((1, C_out, TP), lambda n, t: (n, 0, t)),
            compiler_params=pltpu.CompilerParams(
                # Both axes are independent -> shardable across v7x's two
                # TensorCores; neutral on v5e/v6e.
                dimension_semantics=("parallel", "parallel"),
                vmem_limit_bytes=vmem_limit,
            ),
        )(w_taps, scale, bias2, xf, xf)

    try:
        out_flat = call(True)
    except Exception:
        # Some JAX builds reject single-buffered pipeline_mode; fall back to
        # default double buffering for the (small) constant operands.
        out_flat = call(False)

    # Valid-window slice of the *output* (smallest tensor).  The kernel
    # computes full-width rows so its stores stay lane-dense; rows >= Ho and
    # columns >= Wo are dropped here.
    # TODO(synk): emit (Ho, Wo) directly once the in-kernel (TP,)->(TH, W)
    # lane re-split relayout is worth the risk.
    return out_flat.reshape(N, C_out, H, W)[:, :, :Ho, :Wo]


def _reference(x, v, g, bias):
    # Pure-JAX f32 reference: weight_norm (dim=0) + VALID conv2d + bias.
    C_out = v.shape[0]
    v32 = v.astype(jnp.float32)
    norm = jnp.sqrt(jnp.sum(v32 * v32, axis=(1, 2, 3), keepdims=True))
    w = v32 * (g.astype(jnp.float32).reshape(C_out, 1, 1, 1) / norm)
    y = jax.lax.conv_general_dilated(
        x.astype(jnp.float32), w, window_strides=(1, 1), padding="VALID",
        dimension_numbers=("NCHW", "OIHW", "NCHW"),
        precision=jax.lax.Precision.HIGHEST)
    return y + bias.astype(jnp.float32).reshape(1, C_out, 1, 1)


def _run_case(key, N, C_in, H, W, C_out, kH, kW, **kwargs):
    k_x, k_v, k_g, k_b = jax.random.split(key, 4)
    x = jax.random.normal(k_x, (N, C_in, H, W), dtype=jnp.float32)
    v = jax.random.normal(k_v, (C_out, C_in, kH, kW), dtype=jnp.float32) * 0.1
    g = jax.random.uniform(k_g, (C_out,), dtype=jnp.float32,
                           minval=0.5, maxval=1.5)
    b = jax.random.normal(k_b, (C_out,), dtype=jnp.float32) * 0.05

    out = jax.block_until_ready(norm_conv2d(x, v, g, b, **kwargs))
    ref = _reference(x, v, g, b)
    assert out.shape == (N, C_out, H - kH + 1, W - kW + 1), out.shape
    err = float(jnp.max(jnp.abs(out.astype(jnp.float32) - ref)))
    assert err < 1e-2, err


if __name__ == "__main__":
    key = jax.random.PRNGKey(0)
    k1, k2 = jax.random.split(key)
    # NormConv2d(4, 8, kernel_size=3): auto-picked row tile (whole image/step).
    _run_case(k1, N=2, C_in=4, H=16, W=16, C_out=8, kH=3, kW=3)
    # Non-square kernel + forced row tiling: exercises the halo operand and
    # its edge clamp (3 row tiles of 8 rows each).
    _run_case(k2, N=1, C_in=3, H=24, W=16, C_out=6, kH=3, kW=5, row_tile=8)
    print("KERNEL_OK")
</pallas_src>

<mosaic_0001>
module attributes {stable_mosaic.version = 11 : i64} {
  func.func @kernel(%arg0: i32, %arg1: i32, %arg2: memref<9x8x4xf32, #tpu.memory_space<vmem>>, %arg3: memref<8x1xf32, #tpu.memory_space<vmem>>, %arg4: memref<8x1xf32, #tpu.memory_space<vmem>>, %arg5: memref<1x4x256xf32, #tpu.memory_space<vmem>>, %arg6: memref<1x4x128xf32, #tpu.memory_space<vmem>>, %arg7: memref<1x8x256xf32, #tpu.memory_space<vmem>>) attributes {dimension_semantics = [#tpu.dimension_semantics<parallel>, #tpu.dimension_semantics<parallel>], iteration_bounds = array<i64: 2, 1>, scalar_prefetch = 0 : i64, scratch_operands = 0 : i64, tpu.core_type = #tpu.core_type<tc>, window_params = [{pipeline_mode = #tpu.pipeline_mode<synchronous>, transform_indices = @transform_0, window_bounds = array<i64: 9, 8, 4>}, {pipeline_mode = #tpu.pipeline_mode<synchronous>, transform_indices = @transform_1, window_bounds = array<i64: 8, 1>}, {pipeline_mode = #tpu.pipeline_mode<synchronous>, transform_indices = @transform_2, window_bounds = array<i64: 8, 1>}, {transform_indices = @transform_3, window_bounds = array<i64: 1, 4, 256>}, {transform_indices = @transform_4, window_bounds = array<i64: 1, 4, 128>}, {transform_indices = @transform_5, window_bounds = array<i64: 1, 8, 256>}]} {
    %c0 = arith.constant 0 : index
    %c0_0 = arith.constant 0 : index
    %c0_1 = arith.constant 0 : index
    %0 = vector.load %arg5[%c0, %c0_0, %c0_1] : memref<1x4x256xf32, #tpu.memory_space<vmem>>, vector<1x4x256xf32>
    %1 = vector.shape_cast %0 : vector<1x4x256xf32> to vector<4x256xf32>
    %c0_2 = arith.constant 0 : index
    %c0_3 = arith.constant 0 : index
    %c0_4 = arith.constant 0 : index
    %2 = vector.load %arg6[%c0_2, %c0_3, %c0_4] : memref<1x4x128xf32, #tpu.memory_space<vmem>>, vector<1x4x128xf32>
    %3 = vector.shape_cast %2 : vector<1x4x128xf32> to vector<4x128xf32>
    %4 = tpu.concatenate %1, %3 in 1 : vector<4x256xf32>, vector<4x128xf32> -> vector<4x384xf32>
    %5 = vector.extract_strided_slice %4 {offsets = [0, 0], sizes = [4, 256], strides = [1, 1]} : vector<4x384xf32> to vector<4x256xf32>
    %c0_5 = arith.constant 0 : index
    %c0_6 = arith.constant 0 : index
    %c0_7 = arith.constant 0 : index
    %6 = vector.load %arg2[%c0_5, %c0_6, %c0_7] : memref<9x8x4xf32, #tpu.memory_space<vmem>>, vector<1x8x4xf32>
    %7 = vector.shape_cast %6 : vector<1x8x4xf32> to vector<8x4xf32>
    %cst = arith.constant dense<0.000000e+00> : vector<8x256xf32>
    %8 = tpu.matmul %7, %5, %cst {dimension_numbers = #tpu.dot_dimension_numbers<[1], [0], [0], [1], [0, 0, 1, 1], [], []>} : vector<8x4xf32>, vector<4x256xf32>, vector<8x256xf32> -> vector<8x256xf32>
    %9 = vector.extract_strided_slice %4 {offsets = [0, 1], sizes = [4, 256], strides = [1, 1]} : vector<4x384xf32> to vector<4x256xf32>
    %c1 = arith.constant 1 : index
    %c0_8 = arith.constant 0 : index
    %c0_9 = arith.constant 0 : index
    %10 = vector.load %arg2[%c1, %c0_8, %c0_9] : memref<9x8x4xf32, #tpu.memory_space<vmem>>, vector<1x8x4xf32>
    %11 = vector.shape_cast %10 : vector<1x8x4xf32> to vector<8x4xf32>
    %cst_10 = arith.constant dense<0.000000e+00> : vector<8x256xf32>
    %12 = tpu.matmul %11, %9, %cst_10 {dimension_numbers = #tpu.dot_dimension_numbers<[1], [0], [0], [1], [0, 0, 1, 1], [], []>} : vector<8x4xf32>, vector<4x256xf32>, vector<8x256xf32> -> vector<8x256xf32>
    %13 = arith.addf %8, %12 : vector<8x256xf32>
    %14 = vector.extract_strided_slice %4 {offsets = [0, 2], sizes = [4, 256], strides = [1, 1]} : vector<4x384xf32> to vector<4x256xf32>
    %c2 = arith.constant 2 : index
    %c0_11 = arith.constant 0 : index
    %c0_12 = arith.constant 0 : index
    %15 = vector.load %arg2[%c2, %c0_11, %c0_12] : memref<9x8x4xf32, #tpu.memory_space<vmem>>, vector<1x8x4xf32>
    %16 = vector.shape_cast %15 : vector<1x8x4xf32> to vector<8x4xf32>
    %cst_13 = arith.constant dense<0.000000e+00> : vector<8x256xf32>
    %17 = tpu.matmul %16, %14, %cst_13 {dimension_numbers = #tpu.dot_dimension_numbers<[1], [0], [0], [1], [0, 0, 1, 1], [], []>} : vector<8x4xf32>, vector<4x256xf32>, vector<8x256xf32> -> vector<8x256xf32>
    %18 = arith.addf %13, %17 : vector<8x256xf32>
    %19 = vector.extract_strided_slice %4 {offsets = [0, 16], sizes = [4, 256], strides = [1, 1]} : vector<4x384xf32> to vector<4x256xf32>
    %c3 = arith.constant 3 : index
    %c0_14 = arith.constant 0 : index
    %c0_15 = arith.constant 0 : index
    %20 = vector.load %arg2[%c3, %c0_14, %c0_15] : memref<9x8x4xf32, #tpu.memory_space<vmem>>, vector<1x8x4xf32>
    %21 = vector.shape_cast %20 : vector<1x8x4xf32> to vector<8x4xf32>
    %cst_16 = arith.constant dense<0.000000e+00> : vector<8x256xf32>
    %22 = tpu.matmul %21, %19, %cst_16 {dimension_numbers = #tpu.dot_dimension_numbers<[1], [0], [0], [1], [0, 0, 1, 1], [], []>} : vector<8x4xf32>, vector<4x256xf32>, vector<8x256xf32> -> vector<8x256xf32>
    %23 = arith.addf %18, %22 : vector<8x256xf32>
    %24 = vector.extract_strided_slice %4 {offsets = [0, 17], sizes = [4, 256], strides = [1, 1]} : vector<4x384xf32> to vector<4x256xf32>
    %c4 = arith.constant 4 : index
    %c0_17 = arith.constant 0 : index
    %c0_18 = arith.constant 0 : index
    %25 = vector.load %arg2[%c4, %c0_17, %c0_18] : memref<9x8x4xf32, #tpu.memory_space<vmem>>, vector<1x8x4xf32>
    %26 = vector.shape_cast %25 : vector<1x8x4xf32> to vector<8x4xf32>
    %cst_19 = arith.constant dense<0.000000e+00> : vector<8x256xf32>
    %27 = tpu.matmul %26, %24, %cst_19 {dimension_numbers = #tpu.dot_dimension_numbers<[1], [0], [0], [1], [0, 0, 1, 1], [], []>} : vector<8x4xf32>, vector<4x256xf32>, vector<8x256xf32> -> vector<8x256xf32>
    %28 = arith.addf %23, %27 : vector<8x256xf32>
    %29 = vector.extract_strided_slice %4 {offsets = [0, 18], sizes = [4, 256], strides = [1, 1]} : vector<4x384xf32> to vector<4x256xf32>
    %c5 = arith.constant 5 : index
    %c0_20 = arith.constant 0 : index
    %c0_21 = arith.constant 0 : index
    %30 = vector.load %arg2[%c5, %c0_20, %c0_21] : memref<9x8x4xf32, #tpu.memory_space<vmem>>, vector<1x8x4xf32>
    %31 = vector.shape_cast %30 : vector<1x8x4xf32> to vector<8x4xf32>
    %cst_22 = arith.constant dense<0.000000e+00> : vector<8x256xf32>
    %32 = tpu.matmul %31, %29, %cst_22 {dimension_numbers = #tpu.dot_dimension_numbers<[1], [0], [0], [1], [0, 0, 1, 1], [], []>} : vector<8x4xf32>, vector<4x256xf32>, vector<8x256xf32> -> vector<8x256xf32>
    %33 = arith.addf %28, %32 : vector<8x256xf32>
    %34 = vector.extract_strided_slice %4 {offsets = [0, 32], sizes = [4, 256], strides = [1, 1]} : vector<4x384xf32> to vector<4x256xf32>
    %c6 = arith.constant 6 : index
    %c0_23 = arith.constant 0 : index
    %c0_24 = arith.constant 0 : index
    %35 = vector.load %arg2[%c6, %c0_23, %c0_24] : memref<9x8x4xf32, #tpu.memory_space<vmem>>, vector<1x8x4xf32>
    %36 = vector.shape_cast %35 : vector<1x8x4xf32> to vector<8x4xf32>
    %cst_25 = arith.constant dense<0.000000e+00> : vector<8x256xf32>
    %37 = tpu.matmul %36, %34, %cst_25 {dimension_numbers = #tpu.dot_dimension_numbers<[1], [0], [0], [1], [0, 0, 1, 1], [], []>} : vector<8x4xf32>, vector<4x256xf32>, vector<8x256xf32> -> vector<8x256xf32>
    %38 = arith.addf %33, %37 : vector<8x256xf32>
    %39 = vector.extract_strided_slice %4 {offsets = [0, 33], sizes = [4, 256], strides = [1, 1]} : vector<4x384xf32> to vector<4x256xf32>
    %c7 = arith.constant 7 : index
    %c0_26 = arith.constant 0 : index
    %c0_27 = arith.constant 0 : index
    %40 = vector.load %arg2[%c7, %c0_26, %c0_27] : memref<9x8x4xf32, #tpu.memory_space<vmem>>, vector<1x8x4xf32>
    %41 = vector.shape_cast %40 : vector<1x8x4xf32> to vector<8x4xf32>
    %cst_28 = arith.constant dense<0.000000e+00> : vector<8x256xf32>
    %42 = tpu.matmul %41, %39, %cst_28 {dimension_numbers = #tpu.dot_dimension_numbers<[1], [0], [0], [1], [0, 0, 1, 1], [], []>} : vector<8x4xf32>, vector<4x256xf32>, vector<8x256xf32> -> vector<8x256xf32>
    %43 = arith.addf %38, %42 : vector<8x256xf32>
    %44 = vector.extract_strided_slice %4 {offsets = [0, 34], sizes = [4, 256], strides = [1, 1]} : vector<4x384xf32> to vector<4x256xf32>
    %c8 = arith.constant 8 : index
    %c0_29 = arith.constant 0 : index
    %c0_30 = arith.constant 0 : index
    %45 = vector.load %arg2[%c8, %c0_29, %c0_30] : memref<9x8x4xf32, #tpu.memory_space<vmem>>, vector<1x8x4xf32>
    %46 = vector.shape_cast %45 : vector<1x8x4xf32> to vector<8x4xf32>
    %cst_31 = arith.constant dense<0.000000e+00> : vector<8x256xf32>
    %47 = tpu.matmul %46, %44, %cst_31 {dimension_numbers = #tpu.dot_dimension_numbers<[1], [0], [0], [1], [0, 0, 1, 1], [], []>} : vector<8x4xf32>, vector<4x256xf32>, vector<8x256xf32> -> vector<8x256xf32>
    %48 = arith.addf %43, %47 : vector<8x256xf32>
    %c0_32 = arith.constant 0 : index
    %c0_33 = arith.constant 0 : index
    %49 = vector.load %arg3[%c0_32, %c0_33] : memref<8x1xf32, #tpu.memory_space<vmem>>, vector<8x1xf32>
    %50 = vector.broadcast %49 : vector<8x1xf32> to vector<8x256xf32>
    %51 = arith.mulf %48, %50 : vector<8x256xf32>
    %c0_34 = arith.constant 0 : index
    %c0_35 = arith.constant 0 : index
    %52 = vector.load %arg4[%c0_34, %c0_35] : memref<8x1xf32, #tpu.memory_space<vmem>>, vector<8x1xf32>
    %53 = vector.broadcast %52 : vector<8x1xf32> to vector<8x256xf32>
    %54 = arith.addf %51, %53 : vector<8x256xf32>
    %c0_36 = arith.constant 0 : index
    %c0_37 = arith.constant 0 : index
    %c0_38 = arith.constant 0 : index
    %55 = vector.load %arg7[%c0_36, %c0_37, %c0_38] : memref<1x8x256xf32, #tpu.memory_space<vmem>>, vector<1x8x256xf32>
    %56 = vector.shape_cast %55 : vector<1x8x256xf32> to vector<8x256xf32>
    %57 = vector.shape_cast %54 : vector<8x256xf32> to vector<1x8x256xf32>
    tpu.vector_store %arg7[%c0_36, %c0_37, %c0_38], %57 {strides = array<i32>} : memref<1x8x256xf32, #tpu.memory_space<vmem>>, vector<1x8x256xf32>,
    return
  }
  func.func @transform_0(%arg0: i32, %arg1: i32) -> (i32, i32, i32) {
    %c0_i32 = arith.constant 0 : i32
    %c0_i32_0 = arith.constant 0 : i32
    %c0_i32_1 = arith.constant 0 : i32
    %c0_i32_2 = arith.constant 0 : i32
    return %c0_i32, %c0_i32_0, %c0_i32_1 : i32, i32, i32
  }
  func.func @transform_1(%arg0: i32, %arg1: i32) -> (i32, i32) {
    %c0_i32 = arith.constant 0 : i32
    %c0_i32_0 = arith.constant 0 : i32
    %c0_i32_1 = arith.constant 0 : i32
    return %c0_i32, %c0_i32_0 : i32, i32
  }
  func.func @transform_2(%arg0: i32, %arg1: i32) -> (i32, i32) {
    %c0_i32 = arith.constant 0 : i32
    %c0_i32_0 = arith.constant 0 : i32
    %c0_i32_1 = arith.constant 0 : i32
    return %c0_i32, %c0_i32_0 : i32, i32
  }
  func.func @transform_3(%arg0: i32, %arg1: i32) -> (i32, i32, i32) {
    %c0_i32 = arith.constant 0 : i32
    %c0_i32_0 = arith.constant 0 : i32
    return %arg0, %c0_i32, %arg1 : i32, i32, i32
  }
  func.func @transform_4(%arg0: i32, %arg1: i32) -> (i32, i32, i32) {
    %c1_i32 = arith.constant 1 : i32
    %0 = arith.addi %arg1, %c1_i32 : i32
    %c2_i32 = arith.constant 2 : i32
    %1 = arith.muli %0, %c2_i32 : i32
    %c1_i32_0 = arith.constant 1 : i32
    %2 = arith.minsi %1, %c1_i32_0 : i32
    %c0_i32 = arith.constant 0 : i32
    %c0_i32_1 = arith.constant 0 : i32
    return %arg0, %c0_i32, %2 : i32, i32, i32
  }
  func.func @transform_5(%arg0: i32, %arg1: i32) -> (i32, i32, i32) {
    %c0_i32 = arith.constant 0 : i32
    %c0_i32_0 = arith.constant 0 : i32
    return %arg0, %c0_i32, %arg1 : i32, i32, i32
  }
}

module attributes {stable_mosaic.version = 11 : i64} {
  func.func @kernel(%arg0: i32, %arg1: i32, %arg2: memref<9x8x4xf32, #tpu.memory_space<vmem>>, %arg3: memref<8x1xf32, #tpu.memory_space<vmem>>, %arg4: memref<8x1xf32, #tpu.memory_space<vmem>>, %arg5: memref<1x4x256xf32, #tpu.memory_space<vmem>>, %arg6: memref<1x4x128xf32, #tpu.memory_space<vmem>>, %arg7: memref<1x8x256xf32, #tpu.memory_space<vmem>>) attributes {dimension_semantics = [#tpu.dimension_semantics<parallel>, #tpu.dimension_semantics<parallel>], iteration_bounds = array<i64: 2, 1>, scalar_prefetch = 0 : i64, scratch_operands = 0 : i64, tpu.core_type = #tpu.core_type<tc>, window_params = [{pipeline_mode = #tpu.pipeline_mode<synchronous>, transform_indices = @transform_0, window_bounds = array<i64: 9, 8, 4>}, {pipeline_mode = #tpu.pipeline_mode<synchronous>, transform_indices = @transform_1, window_bounds = array<i64: 8, 1>}, {pipeline_mode = #tpu.pipeline_mode<synchronous>, transform_indices = @transform_2, window_bounds = array<i64: 8, 1>}, {transform_indices = @transform_3, window_bounds = array<i64: 1, 4, 256>}, {transform_indices = @transform_4, window_bounds = array<i64: 1, 4, 128>}, {transform_indices = @transform_5, window_bounds = array<i64: 1, 8, 256>}]} {
    %c0 = arith.constant 0 : index
    %c0_0 = arith.constant 0 : index
    %c0_1 = arith.constant 0 : index
    %0 = vector.load %arg5[%c0, %c0_0, %c0_1] : memref<1x4x256xf32, #tpu.memory_space<vmem>>, vector<1x4x256xf32>
    %1 = vector.shape_cast %0 : vector<1x4x256xf32> to vector<4x256xf32>
    %c0_2 = arith.constant 0 : index
    %c0_3 = arith.constant 0 : index
    %c0_4 = arith.constant 0 : index
    %2 = vector.load %arg6[%c0_2, %c0_3, %c0_4] : memref<1x4x128xf32, #tpu.memory_space<vmem>>, vector<1x4x128xf32>
    %3 = vector.shape_cast %2 : vector<1x4x128xf32> to vector<4x128xf32>
    %4 = tpu.concatenate %1, %3 in 1 : vector<4x256xf32>, vector<4x128xf32> -> vector<4x384xf32>
    %5 = vector.extract_strided_slice %4 {offsets = [0, 0], sizes = [4, 256], strides = [1, 1]} : vector<4x384xf32> to vector<4x256xf32>
    %c0_5 = arith.constant 0 : index
    %c0_6 = arith.constant 0 : index
    %c0_7 = arith.constant 0 : index
    %6 = vector.load %arg2[%c0_5, %c0_6, %c0_7] : memref<9x8x4xf32, #tpu.memory_space<vmem>>, vector<1x8x4xf32>
    %7 = vector.shape_cast %6 : vector<1x8x4xf32> to vector<8x4xf32>
    %cst = arith.constant dense<0.000000e+00> : vector<8x256xf32>
    %8 = tpu.matmul %7, %5, %cst {dimension_numbers = #tpu.dot_dimension_numbers<[1], [0], [0], [1], [0, 0, 1, 1], [], []>} : vector<8x4xf32>, vector<4x256xf32>, vector<8x256xf32> -> vector<8x256xf32>
    %9 = vector.extract_strided_slice %4 {offsets = [0, 1], sizes = [4, 256], strides = [1, 1]} : vector<4x384xf32> to vector<4x256xf32>
    %c1 = arith.constant 1 : index
    %c0_8 = arith.constant 0 : index
    %c0_9 = arith.constant 0 : index
    %10 = vector.load %arg2[%c1, %c0_8, %c0_9] : memref<9x8x4xf32, #tpu.memory_space<vmem>>, vector<1x8x4xf32>
    %11 = vector.shape_cast %10 : vector<1x8x4xf32> to vector<8x4xf32>
    %cst_10 = arith.constant dense<0.000000e+00> : vector<8x256xf32>
    %12 = tpu.matmul %11, %9, %cst_10 {dimension_numbers = #tpu.dot_dimension_numbers<[1], [0], [0], [1], [0, 0, 1, 1], [], []>} : vector<8x4xf32>, vector<4x256xf32>, vector<8x256xf32> -> vector<8x256xf32>
    %13 = arith.addf %8, %12 : vector<8x256xf32>
    %14 = vector.extract_strided_slice %4 {offsets = [0, 2], sizes = [4, 256], strides = [1, 1]} : vector<4x384xf32> to vector<4x256xf32>
    %c2 = arith.constant 2 : index
    %c0_11 = arith.constant 0 : index
    %c0_12 = arith.constant 0 : index
    %15 = vector.load %arg2[%c2, %c0_11, %c0_12] : memref<9x8x4xf32, #tpu.memory_space<vmem>>, vector<1x8x4xf32>
    %16 = vector.shape_cast %15 : vector<1x8x4xf32> to vector<8x4xf32>
    %cst_13 = arith.constant dense<0.000000e+00> : vector<8x256xf32>
    %17 = tpu.matmul %16, %14, %cst_13 {dimension_numbers = #tpu.dot_dimension_numbers<[1], [0], [0], [1], [0, 0, 1, 1], [], []>} : vector<8x4xf32>, vector<4x256xf32>, vector<8x256xf32> -> vector<8x256xf32>
    %18 = arith.addf %13, %17 : vector<8x256xf32>
    %19 = vector.extract_strided_slice %4 {offsets = [0, 16], sizes = [4, 256], strides = [1, 1]} : vector<4x384xf32> to vector<4x256xf32>
    %c3 = arith.constant 3 : index
    %c0_14 = arith.constant 0 : index
    %c0_15 = arith.constant 0 : index
    %20 = vector.load %arg2[%c3, %c0_14, %c0_15] : memref<9x8x4xf32, #tpu.memory_space<vmem>>, vector<1x8x4xf32>
    %21 = vector.shape_cast %20 : vector<1x8x4xf32> to vector<8x4xf32>
    %cst_16 = arith.constant dense<0.000000e+00> : vector<8x256xf32>
    %22 = tpu.matmul %21, %19, %cst_16 {dimension_numbers = #tpu.dot_dimension_numbers<[1], [0], [0], [1], [0, 0, 1, 1], [], []>} : vector<8x4xf32>, vector<4x256xf32>, vector<8x256xf32> -> vector<8x256xf32>
    %23 = arith.addf %18, %22 : vector<8x256xf32>
    %24 = vector.extract_strided_slice %4 {offsets = [0, 17], sizes = [4, 256], strides = [1, 1]} : vector<4x384xf32> to vector<4x256xf32>
    %c4 = arith.constant 4 : index
    %c0_17 = arith.constant 0 : index
    %c0_18 = arith.constant 0 : index
    %25 = vector.load %arg2[%c4, %c0_17, %c0_18] : memref<9x8x4xf32, #tpu.memory_space<vmem>>, vector<1x8x4xf32>
    %26 = vector.shape_cast %25 : vector<1x8x4xf32> to vector<8x4xf32>
    %cst_19 = arith.constant dense<0.000000e+00> : vector<8x256xf32>
    %27 = tpu.matmul %26, %24, %cst_19 {dimension_numbers = #tpu.dot_dimension_numbers<[1], [0], [0], [1], [0, 0, 1, 1], [], []>} : vector<8x4xf32>, vector<4x256xf32>, vector<8x256xf32> -> vector<8x256xf32>
    %28 = arith.addf %23, %27 : vector<8x256xf32>
    %29 = vector.extract_strided_slice %4 {offsets = [0, 18], sizes = [4, 256], strides = [1, 1]} : vector<4x384xf32> to vector<4x256xf32>
    %c5 = arith.constant 5 : index
    %c0_20 = arith.constant 0 : index
    %c0_21 = arith.constant 0 : index
    %30 = vector.load %arg2[%c5, %c0_20, %c0_21] : memref<9x8x4xf32, #tpu.memory_space<vmem>>, vector<1x8x4xf32>
    %31 = vector.shape_cast %30 : vector<1x8x4xf32> to vector<8x4xf32>
    %cst_22 = arith.constant dense<0.000000e+00> : vector<8x256xf32>
    %32 = tpu.matmul %31, %29, %cst_22 {dimension_numbers = #tpu.dot_dimension_numbers<[1], [0], [0], [1], [0, 0, 1, 1], [], []>} : vector<8x4xf32>, vector<4x256xf32>, vector<8x256xf32> -> vector<8x256xf32>
    %33 = arith.addf %28, %32 : vector<8x256xf32>
    %34 = vector.extract_strided_slice %4 {offsets = [0, 32], sizes = [4, 256], strides = [1, 1]} : vector<4x384xf32> to vector<4x256xf32>
    %c6 = arith.constant 6 : index
    %c0_23 = arith.constant 0 : index
    %c0_24 = arith.constant 0 : index
    %35 = vector.load %arg2[%c6, %c0_23, %c0_24] : memref<9x8x4xf32, #tpu.memory_space<vmem>>, vector<1x8x4xf32>
    %36 = vector.shape_cast %35 : vector<1x8x4xf32> to vector<8x4xf32>
    %cst_25 = arith.constant dense<0.000000e+00> : vector<8x256xf32>
    %37 = tpu.matmul %36, %34, %cst_25 {dimension_numbers = #tpu.dot_dimension_numbers<[1], [0], [0], [1], [0, 0, 1, 1], [], []>} : vector<8x4xf32>, vector<4x256xf32>, vector<8x256xf32> -> vector<8x256xf32>
    %38 = arith.addf %33, %37 : vector<8x256xf32>
    %39 = vector.extract_strided_slice %4 {offsets = [0, 33], sizes = [4, 256], strides = [1, 1]} : vector<4x384xf32> to vector<4x256xf32>
    %c7 = arith.constant 7 : index
    %c0_26 = arith.constant 0 : index
    %c0_27 = arith.constant 0 : index
    %40 = vector.load %arg2[%c7, %c0_26, %c0_27] : memref<9x8x4xf32, #tpu.memory_space<vmem>>, vector<1x8x4xf32>
    %41 = vector.shape_cast %40 : vector<1x8x4xf32> to vector<8x4xf32>
    %cst_28 = arith.constant dense<0.000000e+00> : vector<8x256xf32>
    %42 = tpu.matmul %41, %39, %cst_28 {dimension_numbers = #tpu.dot_dimension_numbers<[1], [0], [0], [1], [0, 0, 1, 1], [], []>} : vector<8x4xf32>, vector<4x256xf32>, vector<8x256xf32> -> vector<8x256xf32>
    %43 = arith.addf %38, %42 : vector<8x256xf32>
    %44 = vector.extract_strided_slice %4 {offsets = [0, 34], sizes = [4, 256], strides = [1, 1]} : vector<4x384xf32> to vector<4x256xf32>
    %c8 = arith.constant 8 : index
    %c0_29 = arith.constant 0 : index
    %c0_30 = arith.constant 0 : index
    %45 = vector.load %arg2[%c8, %c0_29, %c0_30] : memref<9x8x4xf32, #tpu.memory_space<vmem>>, vector<1x8x4xf32>
    %46 = vector.shape_cast %45 : vector<1x8x4xf32> to vector<8x4xf32>
    %cst_31 = arith.constant dense<0.000000e+00> : vector<8x256xf32>
    %47 = tpu.matmul %46, %44, %cst_31 {dimension_numbers = #tpu.dot_dimension_numbers<[1], [0], [0], [1], [0, 0, 1, 1], [], []>} : vector<8x4xf32>, vector<4x256xf32>, vector<8x256xf32> -> vector<8x256xf32>
    %48 = arith.addf %43, %47 : vector<8x256xf32>
    %c0_32 = arith.constant 0 : index
    %c0_33 = arith.constant 0 : index
    %49 = vector.load %arg3[%c0_32, %c0_33] : memref<8x1xf32, #tpu.memory_space<vmem>>, vector<8x1xf32>
    %50 = vector.broadcast %49 : vector<8x1xf32> to vector<8x256xf32>
    %51 = arith.mulf %48, %50 : vector<8x256xf32>
    %c0_34 = arith.constant 0 : index
    %c0_35 = arith.constant 0 : index
    %52 = vector.load %arg4[%c0_34, %c0_35] : memref<8x1xf32, #tpu.memory_space<vmem>>, vector<8x1xf32>
    %53 = vector.broadcast %52 : vector<8x1xf32> to vector<8x256xf32>
    %54 = arith.addf %51, %53 : vector<8x256xf32>
    %c0_36 = arith.constant 0 : index
    %c0_37 = arith.constant 0 : index
    %c0_38 = arith.constant 0 : index
    %55 = vector.load %arg7[%c0_36, %c0_37, %c0_38] : memref<1x8x256xf32, #tpu.memory_space<vmem>>, vector<1x8x256xf32>
    %56 = vector.shape_cast %55 : vector<1x8x256xf32> to vector<8x256xf32>
    %57 = vector.shape_cast %54 : vector<8x256xf32> to vector<1x8x256xf32>
    tpu.vector_store %arg7[%c0_36, %c0_37, %c0_38], %57 {strides = array<i32>} : memref<1x8x256xf32, #tpu.memory_space<vmem>>, vector<1x8x256xf32>,
    return
  }
  func.func @transform_0(%arg0: i32, %arg1: i32) -> (i32, i32, i32) {
    %c0_i32 = arith.constant 0 : i32
    %c0_i32_0 = arith.constant 0 : i32
    %c0_i32_1 = arith.constant 0 : i32
    %c0_i32_2 = arith.constant 0 : i32
    return %c0_i32, %c0_i32_0, %c0_i32_1 : i32, i32, i32
  }
  func.func @transform_1(%arg0: i32, %arg1: i32) -> (i32, i32) {
    %c0_i32 = arith.constant 0 : i32
    %c0_i32_0 = arith.constant 0 : i32
    %c0_i32_1 = arith.constant 0 : i32
    return %c0_i32, %c0_i32_0 : i32, i32
  }
  func.func @transform_2(%arg0: i32, %arg1: i32) -> (i32, i32) {
    %c0_i32 = arith.constant 0 : i32
    %c0_i32_0 = arith.constant 0 : i32
    %c0_i32_1 = arith.constant 0 : i32
    return %c0_i32, %c0_i32_0 : i32, i32
  }
  func.func @transform_3(%arg0: i32, %arg1: i32) -> (i32, i32, i32) {
    %c0_i32 = arith.constant 0 : i32
    %c0_i32_0 = arith.constant 0 : i32
    return %arg0, %c0_i32, %arg1 : i32, i32, i32
  }
  func.func @transform_4(%arg0: i32, %arg1: i32) -> (i32, i32, i32) {
    %c1_i32 = arith.constant 1 : i32
    %0 = arith.addi %arg1, %c1_i32 : i32
    %c2_i32 = arith.constant 2 : i32
    %1 = arith.muli %0, %c2_i32 : i32
    %c1_i32_0 = arith.constant 1 : i32
    %2 = arith.minsi %1, %c1_i32_0 : i32
    %c0_i32 = arith.constant 0 : i32
    %c0_i32_1 = arith.constant 0 : i32
    return %arg0, %c0_i32, %2 : i32, i32, i32
  }
  func.func @transform_5(%arg0: i32, %arg1: i32) -> (i32, i32, i32) {
    %c0_i32 = arith.constant 0 : i32
    %c0_i32_0 = arith.constant 0 : i32
    return %arg0, %c0_i32, %arg1 : i32, i32, i32
  }
}

</mosaic_0001>

<bundles_post_ra>
// kernel: tpu_custom_call.1
= control target key start
LH: loop header
LB: loop body
LE: loop exit
PB: predicated region body
PF: predicated region fallthrough
CT: control target
= control target key end

     0   :  { %10 = vsyncpa [#allocation3], 0  ;;  %s1669_s0 = inlined_call_operand.vmem [shape: f32[9,8,4], index: 0, kind: input, shape index: {}]   ;;  %s1670_s1 = inlined_call_operand.vmem [shape: f32[8,1], index: 1, kind: input, shape index: {}]   ;;  %s1671_s2 = inlined_call_operand.vmem [shape: f32[8,1], index: 2, kind: input, shape index: {}]   ;;  %s1672_s3 = inlined_call_operand.vmem [shape: f32[2,4,256], index: 3, kind: input, shape index: {}]   ;;  %s1673_s4 = inlined_call_operand.vmem [shape: f32[2,4,256], index: 4, kind: input, shape index: {}]   ;;  %s1674_s5 = inlined_call_operand.hbm [shape: f32[2,8,256], index: 5, kind: output, shape index: {}]  }
   0x1   :  { %12 = vsyncpa [#allocation3 + $0x1], 0  ;;  %s1496_s18 = smov 0   ;;  %s1498_s19 = smov 0  }
   0x2   :  { %s1500_s20 = smov 0   ;;  %s1502_s21 = smov 0  }
   0x3   :  { %s1504_s22 = smov 0   ;;  %s1506_s23 = smov 0  }
   0x4 LB: > { %s1254_s24 = sadd.s32 4294967295, %s1453_s23   ;;  %s1255_s25 = sadd.s32 4294967294, %s1453_s23   ;;  %s1453_s23 = sphi %s1506_s23, %s18_s23   ;;  %s1449_s22 = sphi %s1504_s22, %s1681_s22   ;;  %s1445_s21 = sphi %s1502_s21, %s1680_s21   ;;  %s1441_s20 = sphi %s1500_s20, %s1679_s20   ;;  %s1437_s19 = sphi %s1498_s19, %s1678_s19   ;;  %s1433_s18 = sphi %s1496_s18, %s1677_s18  }
   0x5   : > { %s30_s26 = sadd.s32 1, %s1449_s22  ;;  %s166_s27 = sadd.s32 1, %s1441_s20 }
   0x6   : > { %p32_p0 = scmp.ge.s32.totalorder %s30_s26, 2  ;;  %p176_p1 = scmp.ne.s32.totalorder %s1441_s20, %s1437_s19 }
   0x7   : > { %p177_p2 = scmp.eq.s32.totalorder %s1254_s24, 1  ;;  %p182_p3 = scmp.ne.s32.totalorder %s1437_s19, %s1433_s18 }
   0x8   : > { %s1683_s26 = smov (%p32_p0, %s30_s26), 0  ;;  %p183_p5 = scmp.eq.s32.totalorder %s1255_s25, 1 }
   0x9   : > { %p1536_p4 = por %p177_p2, %p176_p1  ;;  %s161_s29 = ssub.s32 %s1449_s22, %s1683_s26 }
   0xa   : > { %p1258_p6 = scmp.ge.s32.totalorder %s1453_s23, 1  ;;  %p164_p7 = scmp.eq.s32.totalorder %s161_s29, 0 }
   0xb   : > { %p1543_p8 = por %p183_p5, %p182_p3  ;;  %p242_p9 = scmp.lt.s32.totalorder %s1453_s23, 3 }
   0xc   : > { %s1549_s6 = scalar_select %p164_p7, %s1441_s20, %s166_s27  }
   0xd   : > { %p243_p10 = pnand %p1258_p6, %p242_p9 }
   0xe   : > { %p287_p11 = scmp.lt.s32.totalorder (!%p243_p10), %s1445_s21, 1  ;;  %s1456_s16 = smov (!%p243_p10), 127  }
   0xf   : > { %246 = sbr.rel (%p243_p10) target bundleno = 402 (0x192), region = 40  ;;  %s1457_s17 = smov (!%p243_p10), 126  }
  0x10   : > { %s1458_s27 = smov (!%p243_p10), 112   ;;  %s1459_s29 = smov (!%p243_p10), 111  }
  0x11   : > { %s1462_s9 = smov (!%p243_p10), 95   ;;  %s1464_s10 = smov (!%p243_p10), 94  }
  0x12   : > { %s1307_s24 = sshll.u32 (!%p243_p10), %s1445_s21, 8 }
  0x14   : > { %s288_s7 = scalar_select %p287_p11, %s1445_s21, 1  ;;  %v1455_v1 = vmov 0.0   ;;  %vm334_vm0 = vcmask 1043456   ;;  %vm330_vm1 = vcmask 31744   ;;  %v317_v4 = vld [vmem:[%s1669_s0] sm:$0xff]  ;;  %v1463_v5 = vmov 0  }
  0x15   : > { %403 = vmatprep.mubr.f32.mxu0 %v1455_v1  ;;  %481 = vmatprep.mubr.f32.mxu1 %v1455_v1  ;;  %v1133_v6 = vld [vmem:[%s1671_s2] sm:$0xff]  ;;  %vm327_vm2 = vcmask 1039360   ;;  %vm496_vm3 = vcmask 1031168   ;;  %v1264_v16 = vld [vmem:[%s1669_s0 + $0x8] sm:$0xff]  ;;  %vm587_vm4 = vcmask 916480   ;;  %v1271_v22 = vld [vmem:[%s1669_s0 + $0x10] sm:$0xff] }
  0x16   : > { %s1304_s8 = sshll.u32 %s288_s7, 3  ;;  %s1460_s7 = smov 110   ;;  %1374 = vset.pattern.permute.xlu0 %v1463_v5  ;;  %1375 = vset.pattern.permute.xlu1 %v1463_v5  ;;  %v1125_v7 = vld [vmem:[%s1670_s1] sm:$0xff]  ;;  %v1275_v25 = vld [vmem:[%s1669_s0 + $0x18] sm:$0xff]  ;;  %vm678_vm5 = vcmask 908288   ;;  %vm769_vm6 = vcmask 900096  }
  0x17   : > { %s294_s11 = scalar_lea.vmem %s1672_s3, %s1304_s8  ;;  %s1306_s12 = sadd.s32 4, %s1304_s8  ;;  %v1279_v30 = vld [vmem:[%s1669_s0 + $0x20] sm:$0xff]  ;;  %v1283_v37 = vld [vmem:[%s1669_s0 + $0x28] sm:$0xff]  ;;  %vm860_vm7 = vcmask 785408   ;;  %v1287_v42 = vld [vmem:[%s1669_s0 + $0x30] sm:$0xff]  ;;  %vm951_vm8 = vcmask 777216  }
  0x18   : > { %v313_v0 = vld [vmem:[%s294_s11] sm:$0xff]  ;;  %s307_s15 = scalar_lea.vmem %s1673_s4, %s1306_s12  ;;  %s1461_s8 = smov 96   ;;  %v1291_v49 = vld [vmem:[%s1669_s0 + $0x38] sm:$0xff]  ;;  %vm1042_vm9 = vcmask 769024  }
  0x19   : > { %321 = vrot.lane.b32.xlu1 %v313_v0, %s1456_s16  ;;  %v314_v2 = vld [vmem:[%s307_s15] sm:$0xf]  ;;  %v316_v3 = vcombine.high %v313_v0, %v313_v0  ;;  %s1465_s11 = smov [#allocation2]  }
  0x1a   : > { %325 = vrot.lane.b32.xlu0 %v314_v2, %s1456_s16  ;;  %v1295_v54 = vld [vmem:[%s1669_s0 + $0x40] sm:$0xff]  ;;  %s1381_s21 = sshll.u32 %s1465_s11, 4  ;;  %s1382_s21 = int_to_ptr.vmem [resolvable:$false] %s1381_s21 }
  0x1b   : > { %1268 = vmatprep.subr.msk.mxu1 %vm334_vm0, %v316_v3  ;;  %s1383_s12 = scalar_lea.vmem %s1382_s21, 512 }
  0x1c   : > { %1269 = vmatpush1.msk.msra.mxu1 %vm334_vm0, %v313_v0 }
  0x1d   : > { %490 = vrot.lane.b32.xlu1 %v313_v0, %s1457_s17  ;;  %1270 = vmatmul.mubr.msk.f32.vlgmr.msra.gmra.mxu1 %vm330_vm1, %v317_v4 }
  0x1e   : > { %494 = vrot.lane.b32.xlu0 %v314_v2, %s1457_s17  ;;  %661 = vmatprep.mubr.f32.mxu1 %v1455_v1 }
  0x21   : > { %492 = vrot.lane.b32.xlu1 %v316_v3, %s1457_s17 }
  0x22   : > { %323 = vrot.lane.b32.xlu0 %v316_v3, %s1456_s16  ;;  %s283_s16 = sand.u32 1, %s1437_s19  }
  0x23   : > { %s1259_s17 = sshll.u32 %s283_s16, 4 }
  0x24   : > { %s285_s25 = scalar_lea.vmem [#allocation2], %s1259_s17 }
  0x25   : > { %585 = vrot.lane.b32.xlu1 %v314_v2, %s1458_s27 }
  0x26   : > { %583 = vrot.lane.b32.xlu0 %v316_v3, %s1458_s27 }
  0x29   : > { %674 = vrot.lane.b32.xlu1 %v316_v3, %s1459_s29 }
  0x2a   : > { %581 = vrot.lane.b32.xlu0 %v313_v0, %s1458_s27  ;;  %s1160_s27 = sshll.u32 %s285_s25, 4  ;;  %s1161_s27 = int_to_ptr.vmem [resolvable:$true] %s1160_s27 }
  0x2b   : > { %p1384_p1 = scmp.lt.s32.totalorder %s1161_s27, %s1382_s21 }
  0x2d   : > { %672 = vrot.lane.b32.xlu1 %v313_v0, %s1459_s29 }
  0x2e   : > { %676 = vrot.lane.b32.xlu0 %v314_v2, %s1459_s29 }
  0x31   : > { %767 = vrot.lane.b32.xlu1 %v314_v2, %s1460_s7 }
  0x32   : > { %765 = vrot.lane.b32.xlu0 %v316_v3, %s1460_s7 }
  0x35   : > { %856 = vrot.lane.b32.xlu1 %v316_v3, %s1461_s8 }
  0x36   : > { %763 = vrot.lane.b32.xlu0 %v313_v0, %s1460_s7 }
  0x39   : > { %854 = vrot.lane.b32.xlu1 %v313_v0, %s1461_s8 }
  0x3a   : > { %858 = vrot.lane.b32.xlu0 %v314_v2, %s1461_s8  ;;  %s1158_s8 = scalar_lea.hbm %s1674_s5, %s1307_s24 }
  0x3d   : > { %949 = vrot.lane.b32.xlu1 %v314_v2, %s1462_s9 }
  0x3e   : > { %947 = vrot.lane.b32.xlu0 %v316_v3, %s1462_s9 }
  0x41   : > { %1038 = vrot.lane.b32.xlu1 %v316_v3, %s1464_s10 }
  0x42   : > { %945 = vrot.lane.b32.xlu0 %v313_v0, %s1462_s9  ;;  %s1144_s9 = scalar_lea.sflag [#allocation3], %s283_s16 }
  0x45   : > { %1036 = vrot.lane.b32.xlu1 %v313_v0, %s1464_s10 }
  0x46   : > { %1040 = vrot.lane.b32.xlu0 %v314_v2, %s1464_s10  ;;  %s1377_s10 = scalar_lea.vmem %s1161_s27, 256 }
  0x47   : > { %p1378_p12 = scmp.ne.s32.totalorder %s1161_s27, %s1377_s10  ;;  %p1385_p2 = scmp.lt.s32.totalorder %s1383_s12, %s1377_s10 }
  0x49   : > { %1136 = vperm.xlu1 %1375, %v1133_v6   ;;  %p1379_p13 = pnand %p1378_p12, %p1536_p4  ;;  %p1386_p3 = por %p1385_p2, %p1384_p1 }
  0x4a   : > { %1128 = vperm.xlu0 %1374, %v1125_v7  }
  0x4b   : > { %p1380_p0 = pneg %p1379_p13 }
  0x4d   : > { %p1387_p5 = pnand %p1386_p3, %p1380_p0 }
  0x8b   : > { %v322_v8 = vpop.permute.xlu1 %321 }
  0x8c   : > { %v326_v9 = vpop.permute.xlu0 %325 }
  0x8f   : > { %v491_v10 = vpop.permute.xlu1 %490 }
  0x90   : > { %v495_v11 = vpop.permute.xlu0 %494 }
  0x93   : > { %v493_v12 = vpop.permute.xlu1 %492 }
  0x94   : > { %v324_v13 = vpop.permute.xlu0 %323  ;;  %v498_v17 = vsel %vm496_vm3, %v493_v12, %v495_v11  ;;  %v497_v19 = vsel %vm496_vm3, %v491_v10, %v493_v12 }
  0x95   : > { %v329_v14 = vsel %vm327_vm2, %v324_v13, %v326_v9  ;;  %v328_v15 = vsel %vm327_vm2, %v322_v8, %v324_v13 }
  0x96   : > { %1265 = vmatprep.subr.msk.mxu0 %vm334_vm0, %v329_v14 }
  0x97   : > { %v586_v18 = vpop.permute.xlu1 %585  ;;  %1266 = vmatpush1.msk.msra.mxu0 %vm334_vm0, %v328_v15 }
  0x98   : > { %1272 = vmatprep.subr.msk.mxu0 %vm334_vm0, %v498_v17  ;;  %v584_v20 = vpop.permute.xlu0 %583  ;;  %1267 = vmatmul.mubr.msk.f32.vlgmr.msra.gmra.mxu0 %vm330_vm1, %v1264_v16 }
  0x99   : > { %v589_v21 = vsel %vm587_vm4, %v584_v20, %v586_v18  ;;  %1273 = vmatpush1.msk.msra.mxu0 %vm334_vm0, %v497_v19  ;;  %570 = vmatprep.mubr.f32.mxu0 %v1455_v1 }
  0x9a   : > { %1276 = vmatprep.subr.msk.mxu1 %vm334_vm0, %v589_v21 }
  0x9b   : > { %v675_v23 = vpop.permute.xlu1 %674 }
  0x9c   : > { %v582_v24 = vpop.permute.xlu0 %581  ;;  %1274 = vmatmul.mubr.msk.f32.vlgmr.msra.gmra.mxu0 %vm330_vm1, %v1271_v22 }
  0x9d   : > { %v588_v26 = vsel %vm587_vm4, %v582_v24, %v584_v20  ;;  %752 = vmatprep.mubr.f32.mxu0 %v1455_v1 }
  0x9e   : > { %1277 = vmatpush1.msk.msra.mxu1 %vm334_vm0, %v588_v26 }
  0x9f   : > { %v673_v27 = vpop.permute.xlu1 %672  ;;  %1278 = vmatmul.mubr.msk.f32.vlgmr.msra.gmra.mxu1 %vm330_vm1, %v1275_v25 }
  0xa0   : > { %v677_v28 = vpop.permute.xlu0 %676  ;;  %843 = vmatprep.mubr.f32.mxu1 %v1455_v1  ;;  %v679_v31 = vsel %vm678_vm5, %v673_v27, %v675_v23 }
  0xa1   : > { %v680_v29 = vsel %vm678_vm5, %v675_v23, %v677_v28 }
  0xa2   : > { %1280 = vmatprep.subr.msk.mxu0 %vm334_vm0, %v680_v29 }
  0xa3   : > { %v768_v32 = vpop.permute.xlu1 %767  ;;  %1281 = vmatpush1.msk.msra.mxu0 %vm334_vm0, %v679_v31 }
  0xa4   : > { %v766_v33 = vpop.permute.xlu0 %765  ;;  %1282 = vmatmul.mubr.msk.f32.vlgmr.msra.gmra.mxu0 %vm330_vm1, %v1279_v30 }
  0xa5   : > { %v771_v34 = vsel %vm769_vm6, %v766_v33, %v768_v32  ;;  %934 = vmatprep.mubr.f32.mxu0 %v1455_v1 }
  0xa6   : > { %1284 = vmatprep.subr.msk.mxu1 %vm334_vm0, %v771_v34 }
  0xa7   : > { %v857_v35 = vpop.permute.xlu1 %856 }
  0xa8   : > { %v764_v36 = vpop.permute.xlu0 %763 }
  0xa9   : > { %v770_v38 = vsel %vm769_vm6, %v764_v36, %v766_v33 }
  0xaa   : > { %1285 = vmatpush1.msk.msra.mxu1 %vm334_vm0, %v770_v38 }
  0xab   : > { %v855_v39 = vpop.permute.xlu1 %854  ;;  %1286 = vmatmul.mubr.msk.f32.vlgmr.msra.gmra.mxu1 %vm330_vm1, %v1283_v37 }
  0xac   : > { %v859_v40 = vpop.permute.xlu0 %858  ;;  %1025 = vmatprep.mubr.f32.mxu1 %v1455_v1  ;;  %v861_v43 = vsel %vm860_vm7, %v855_v39, %v857_v35 }
  0xad   : > { %v862_v41 = vsel %vm860_vm7, %v857_v35, %v859_v40 }
  0xae   : > { %1288 = vmatprep.subr.msk.mxu0 %vm334_vm0, %v862_v41 }
  0xaf   : > { %v950_v44 = vpop.permute.xlu1 %949  ;;  %1289 = vmatpush1.msk.msra.mxu0 %vm334_vm0, %v861_v43 }
  0xb0   : > { %v948_v45 = vpop.permute.xlu0 %947  ;;  %1290 = vmatmul.mubr.msk.f32.vlgmr.msra.gmra.mxu0 %vm330_vm1, %v1287_v42 }
  0xb1   : > { %v953_v46 = vsel %vm951_vm8, %v948_v45, %v950_v44  ;;  %1116 = vmatprep.mubr.f32.mxu0 %v1455_v1 }
  0xb2   : > { %1292 = vmatprep.subr.msk.mxu1 %vm334_vm0, %v953_v46 }
  0xb3   : > { %v1039_v47 = vpop.permute.xlu1 %1038 }
  0xb4   : > { %v946_v48 = vpop.permute.xlu0 %945 }
  0xb5   : > { %v952_v50 = vsel %vm951_vm8, %v946_v48, %v948_v45 }
  0xb6   : > { %1293 = vmatpush1.msk.msra.mxu1 %vm334_vm0, %v952_v50 }
  0xb7   : > { %v1037_v51 = vpop.permute.xlu1 %1036  ;;  %1294 = vmatmul.mubr.msk.f32.vlgmr.msra.gmra.mxu1 %vm330_vm1, %v1291_v49 }
  0xb8   : > { %v1041_v52 = vpop.permute.xlu0 %1040  ;;  %v1043_v55 = vsel %vm1042_vm9, %v1037_v51, %v1039_v47 }
  0xb9   : > { %v1044_v53 = vsel %vm1042_vm9, %v1039_v47, %v1041_v52 }
  0xba   : > { %1296 = vmatprep.subr.msk.mxu0 %vm334_vm0, %v1044_v53 }
  0xbb   : > { %1297 = vmatpush1.msk.msra.mxu0 %vm334_vm0, %v1043_v55 }
  0xbc   : > { %1298 = vmatmul.mubr.msk.f32.vlgmr.msra.gmra.mxu0 %vm330_vm1, %v1295_v54 }
  0xc4   : > { %v1137_v26 = vpop.permute.xlu1 %1136 }
  0xc5   : > { %v1129_v22 = vpop.permute.xlu0 %1128 }
  0xdd   : > { %v483_v58 = vpop.f32.mrf.mxu1 }
  0xdf   : > { %v485_v59 = vpop.f32.mrf.mxu1 }
 0x158   : > { %v405_v56 = vpop.f32.mrf.mxu0 }
 0x159   : > { %v484_v61 = vadd.f32 %v483_v58, %v405_v56 }
 0x15a   : > { %v407_v57 = vpop.f32.mrf.mxu0 }
 0x15b   : > { %v486_v62 = vadd.f32 %v485_v59, %v407_v57 }
 0x15c   : > { %v572_v60 = vpop.f32.mrf.mxu0 }
 0x15d   : > { %v577_v1 = vadd.f32 %v572_v60, %v484_v61 }
 0x15e   : > { %v574_v63 = vpop.f32.mrf.mxu0 }
 0x15f   : > { %v663_v0 = vpop.f32.mrf.mxu1  ;;  %v578_v2 = vadd.f32 %v574_v63, %v486_v62 }
 0x160   : > { %v668_v5 = vadd.f32 %v663_v0, %v577_v1 }
 0x161   : > { %v665_v3 = vpop.f32.mrf.mxu1 }
 0x162   : > { %v669_v6 = vadd.f32 %v665_v3, %v578_v2 }
 0x164   : > { %v754_v4 = vpop.f32.mrf.mxu0 }
 0x165   : > { %v759_v9 = vadd.f32 %v754_v4, %v668_v5 }
 0x166   : > { %v756_v7 = vpop.f32.mrf.mxu0 }
 0x167   : > { %v760_v10 = vadd.f32 %v756_v7, %v669_v6 }
 0x16b   : > { %v845_v8 = vpop.f32.mrf.mxu1 }
 0x16c   : > { %v850_v13 = vadd.f32 %v845_v8, %v759_v9 }
 0x16d   : > { %v847_v11 = vpop.f32.mrf.mxu1 }
 0x16e   : > { %v851_v14 = vadd.f32 %v847_v11, %v760_v10 }
 0x170   : > { %v936_v12 = vpop.f32.mrf.mxu0 }
 0x171   : > { %v941_v16 = vadd.f32 %v936_v12, %v850_v13 }
 0x172   : > { %v938_v15 = vpop.f32.mrf.mxu0 }
 0x173   : > { %v942_v18 = vadd.f32 %v938_v15, %v851_v14 }
 0x177   : > { %v1027_v17 = vpop.f32.mrf.mxu1 }
 0x178   : > { %v1032_v20 = vadd.f32 %v1027_v17, %v941_v16 }
 0x179   : > { %v1029_v19 = vpop.f32.mrf.mxu1 }
 0x17a   : > { %v1033_v23 = vadd.f32 %v1029_v19, %v942_v18 }
 0x17c   : > { %v1118_v21 = vpop.f32.mrf.mxu0 }
 0x17d   : > { %v1123_v24 = vadd.f32 %v1118_v21, %v1032_v20 }
 0x17e   : > { %v1120_v25 = vpop.f32.mrf.mxu0 }
 0x17f   : > { %v1124_v27 = vadd.f32 %v1120_v25, %v1033_v23  ;;  %v1131_v28 = vmul.f32 %v1129_v22, %v1123_v24 }
 0x181   : > { %v1132_v29 = vmul.f32 %v1129_v22, %v1124_v27  ;;  %v1139_v30 = vadd.f32 %v1137_v26, %v1131_v28 }
 0x183   : > { %v1140_v31 = vadd.f32 %v1137_v26, %v1132_v29  ;;  %1141 = vst [vmem:[%s285_s25] sm:$0xff] %v1139_v30 }
 0x185   : > { %1142 = vst [vmem:[%s285_s25 + $0x8] sm:$0xff] %v1140_v31 }
 0x186   : > { %1390 = shalt.err (!%p1387_p5)
}
 0x187   : > { %s1391_s13 = scalar_lea.hbm %s1158_s8, 256  ;;  %s1395_s16 = scalar_lea.hbm %s1674_s5, 512 }
 0x188   : > { %p1392_p6 = scmp.ne.s32.totalorder %s1158_s8, %s1391_s13  ;;  %p1396_p10 = scmp.lt.s32.totalorder %s1158_s8, %s1674_s5 }
 0x189   : > { %p1397_p11 = scmp.lt.s32.totalorder %s1395_s16, %s1391_s13 }
 0x18a   : > { %p1393_p7 = pnand %p1392_p6, %p1536_p4 }
 0x18b   : > { %p1398_p12 = por %p1397_p11, %p1396_p10 }
 0x18c   : > { %p1394_p9 = pneg %p1393_p7 }
 0x18e   : > { %p1399_p13 = pnand %p1398_p12, %p1394_p9 }
 0x190   : > { %1402 = shalt.err (!%p1399_p13)
}
 0x191   : > { %1309 = dma.vmem_to_hbm [thread:$0]  (%p1536_p4), %s1161_s27, 256, %s1158_s8, %s1144_s9  }
 0x192 PF: > { %p1315_p0 = scmp.ge.s32.totalorder %s1453_s23, 2  ;;  %s1172_s25 = sand.u32 1, %s1433_s18  }
 0x193   : > { %s1173_s29 = scalar_lea.sflag [#allocation3], %s1172_s25 }
 0x194   : > { %p1312_p1 = pnand %p1315_p0, %p1543_p8 }
 0x196   : > { %p1313_p2 = pneg %p1312_p1 }
 0x198   : > { %1428 = dma.done.wait (%p1313_p2), %s1173_s29, 256  }
 0x199   : > { %1430 = vsyncadd (%p1313_p2), %s1173_s29, 4294967040  ;;  %s18_s23 = sadd.s32 1, %s1453_s23   ;;  %s1677_s18 = smov %s1437_s19 }
 0x19a   : > { %p15_p3 = scmp.ge.s32.totalorder %s18_s23, 4   ;;  %s1678_s19 = smov %s1441_s20 }
 0x19b   : > { %s1679_s20 = smov %s1549_s6  ;;  %s1680_s21 = smov %s1449_s22 }
 0x19c   : > { %s1681_s22 = smov %s1683_s26  ;;  %17 = sbr.rel (!%p15_p3) target bundleno = 4 (0x4), region = 86 }
 0x1a1   :  { %1178 = vsyncpa [#allocation3], 1 }
 0x1a2   :  { %1180 = vsyncpa [#allocation3 + $0x1], 1 }

// kernel: tpu_custom_call.1
= control target key start
LH: loop header
LB: loop body
LE: loop exit
PB: predicated region body
PF: predicated region fallthrough
CT: control target
= control target key end

     0   :  { %10 = vsyncpa [#allocation3], 0  ;;  %s1669_s0 = inlined_call_operand.vmem [shape: f32[9,8,4], index: 0, kind: input, shape index: {}]   ;;  %s1670_s1 = inlined_call_operand.vmem [shape: f32[8,1], index: 1, kind: input, shape index: {}]   ;;  %s1671_s2 = inlined_call_operand.vmem [shape: f32[8,1], index: 2, kind: input, shape index: {}]   ;;  %s1672_s3 = inlined_call_operand.vmem [shape: f32[2,4,256], index: 3, kind: input, shape index: {}]   ;;  %s1673_s4 = inlined_call_operand.vmem [shape: f32[2,4,256], index: 4, kind: input, shape index: {}]   ;;  %s1674_s5 = inlined_call_operand.hbm [shape: f32[2,8,256], index: 5, kind: output, shape index: {}]  }
   0x1   :  { %12 = vsyncpa [#allocation3 + $0x1], 0  ;;  %s1496_s18 = smov 0   ;;  %s1498_s19 = smov 0  }
   0x2   :  { %s1500_s20 = smov 0   ;;  %s1502_s21 = smov 0  }
   0x3   :  { %s1504_s22 = smov 0   ;;  %s1506_s23 = smov 0  }
   0x4 LB: > { %s1254_s24 = sadd.s32 4294967295, %s1453_s23   ;;  %s1255_s25 = sadd.s32 4294967294, %s1453_s23   ;;  %s1453_s23 = sphi %s1506_s23, %s18_s23   ;;  %s1449_s22 = sphi %s1504_s22, %s1681_s22   ;;  %s1445_s21 = sphi %s1502_s21, %s1680_s21   ;;  %s1441_s20 = sphi %s1500_s20, %s1679_s20   ;;  %s1437_s19 = sphi %s1498_s19, %s1678_s19   ;;  %s1433_s18 = sphi %s1496_s18, %s1677_s18  }
   0x5   : > { %s30_s26 = sadd.s32 1, %s1449_s22  ;;  %s166_s27 = sadd.s32 1, %s1441_s20 }
   0x6   : > { %p32_p0 = scmp.ge.s32.totalorder %s30_s26, 2  ;;  %p176_p1 = scmp.ne.s32.totalorder %s1441_s20, %s1437_s19 }
   0x7   : > { %p177_p2 = scmp.eq.s32.totalorder %s1254_s24, 1  ;;  %p182_p3 = scmp.ne.s32.totalorder %s1437_s19, %s1433_s18 }
   0x8   : > { %s1683_s26 = smov (%p32_p0, %s30_s26), 0  ;;  %p183_p5 = scmp.eq.s32.totalorder %s1255_s25, 1 }
   0x9   : > { %p1536_p4 = por %p177_p2, %p176_p1  ;;  %s161_s29 = ssub.s32 %s1449_s22, %s1683_s26 }
   0xa   : > { %p1258_p6 = scmp.ge.s32.totalorder %s1453_s23, 1  ;;  %p164_p7 = scmp.eq.s32.totalorder %s161_s29, 0 }
   0xb   : > { %p1543_p8 = por %p183_p5, %p182_p3  ;;  %p242_p9 = scmp.lt.s32.totalorder %s1453_s23, 3 }
   0xc   : > { %s1549_s6 = scalar_select %p164_p7, %s1441_s20, %s166_s27  }
   0xd   : > { %p243_p10 = pnand %p1258_p6, %p242_p9 }
   0xe   : > { %p287_p11 = scmp.lt.s32.totalorder (!%p243_p10), %s1445_s21, 1  ;;  %s1456_s16 = smov (!%p243_p10), 127  }
   0xf   : > { %246 = sbr.rel (%p243_p10) target bundleno = 402 (0x192), region = 40  ;;  %s1457_s17 = smov (!%p243_p10), 126  }
  0x10   : > { %s1458_s27 = smov (!%p243_p10), 112   ;;  %s1459_s29 = smov (!%p243_p10), 111  }
  0x11   : > { %s1462_s9 = smov (!%p243_p10), 95   ;;  %s1464_s10 = smov (!%p243_p10), 94  }
  0x12   : > { %s1307_s24 = sshll.u32 (!%p243_p10), %s1445_s21, 8 }
  0x14   : > { %s288_s7 = scalar_select %p287_p11, %s1445_s21, 1  ;;  %v1455_v1 = vmov 0.0   ;;  %vm334_vm0 = vcmask 1043456   ;;  %vm330_vm1 = vcmask 31744   ;;  %v317_v4 = vld [vmem:[%s1669_s0] sm:$0xff]  ;;  %v1463_v5 = vmov 0  }
  0x15   : > { %403 = vmatprep.mubr.f32.mxu0 %v1455_v1  ;;  %481 = vmatprep.mubr.f32.mxu1 %v1455_v1  ;;  %v1133_v6 = vld [vmem:[%s1671_s2] sm:$0xff]  ;;  %vm327_vm2 = vcmask 1039360   ;;  %vm496_vm3 = vcmask 1031168   ;;  %v1264_v16 = vld [vmem:[%s1669_s0 + $0x8] sm:$0xff]  ;;  %vm587_vm4 = vcmask 916480   ;;  %v1271_v22 = vld [vmem:[%s1669_s0 + $0x10] sm:$0xff] }
  0x16   : > { %s1304_s8 = sshll.u32 %s288_s7, 3  ;;  %s1460_s7 = smov 110   ;;  %1374 = vset.pattern.permute.xlu0 %v1463_v5  ;;  %1375 = vset.pattern.permute.xlu1 %v1463_v5  ;;  %v1125_v7 = vld [vmem:[%s1670_s1] sm:$0xff]  ;;  %v1275_v25 = vld [vmem:[%s1669_s0 + $0x18] sm:$0xff]  ;;  %vm678_vm5 = vcmask 908288   ;;  %vm769_vm6 = vcmask 900096  }
  0x17   : > { %s294_s11 = scalar_lea.vmem %s1672_s3, %s1304_s8  ;;  %s1306_s12 = sadd.s32 4, %s1304_s8  ;;  %v1279_v30 = vld [vmem:[%s1669_s0 + $0x20] sm:$0xff]  ;;  %v1283_v37 = vld [vmem:[%s1669_s0 + $0x28] sm:$0xff]  ;;  %vm860_vm7 = vcmask 785408   ;;  %v1287_v42 = vld [vmem:[%s1669_s0 + $0x30] sm:$0xff]  ;;  %vm951_vm8 = vcmask 777216  }
  0x18   : > { %v313_v0 = vld [vmem:[%s294_s11] sm:$0xff]  ;;  %s307_s15 = scalar_lea.vmem %s1673_s4, %s1306_s12  ;;  %s1461_s8 = smov 96   ;;  %v1291_v49 = vld [vmem:[%s1669_s0 + $0x38] sm:$0xff]  ;;  %vm1042_vm9 = vcmask 769024  }
  0x19   : > { %321 = vrot.lane.b32.xlu1 %v313_v0, %s1456_s16  ;;  %v314_v2 = vld [vmem:[%s307_s15] sm:$0xf]  ;;  %v316_v3 = vcombine.high %v313_v0, %v313_v0  ;;  %s1465_s11 = smov [#allocation2]  }
  0x1a   : > { %325 = vrot.lane.b32.xlu0 %v314_v2, %s1456_s16  ;;  %v1295_v54 = vld [vmem:[%s1669_s0 + $0x40] sm:$0xff]  ;;  %s1381_s21 = sshll.u32 %s1465_s11, 4  ;;  %s1382_s21 = int_to_ptr.vmem [resolvable:$false] %s1381_s21 }
  0x1b   : > { %1268 = vmatprep.subr.msk.mxu1 %vm334_vm0, %v316_v3  ;;  %s1383_s12 = scalar_lea.vmem %s1382_s21, 512 }
  0x1c   : > { %1269 = vmatpush1.msk.msra.mxu1 %vm334_vm0, %v313_v0 }
  0x1d   : > { %490 = vrot.lane.b32.xlu1 %v313_v0, %s1457_s17  ;;  %1270 = vmatmul.mubr.msk.f32.vlgmr.msra.gmra.mxu1 %vm330_vm1, %v317_v4 }
  0x1e   : > { %494 = vrot.lane.b32.xlu0 %v314_v2, %s1457_s17  ;;  %661 = vmatprep.mubr.f32.mxu1 %v1455_v1 }
  0x21   : > { %492 = vrot.lane.b32.xlu1 %v316_v3, %s1457_s17 }
  0x22   : > { %323 = vrot.lane.b32.xlu0 %v316_v3, %s1456_s16  ;;  %s283_s16 = sand.u32 1, %s1437_s19  }
  0x23   : > { %s1259_s17 = sshll.u32 %s283_s16, 4 }
  0x24   : > { %s285_s25 = scalar_lea.vmem [#allocation2], %s1259_s17 }
  0x25   : > { %585 = vrot.lane.b32.xlu1 %v314_v2, %s1458_s27 }
  0x26   : > { %583 = vrot.lane.b32.xlu0 %v316_v3, %s1458_s27 }
  0x29   : > { %674 = vrot.lane.b32.xlu1 %v316_v3, %s1459_s29 }
  0x2a   : > { %581 = vrot.lane.b32.xlu0 %v313_v0, %s1458_s27  ;;  %s1160_s27 = sshll.u32 %s285_s25, 4  ;;  %s1161_s27 = int_to_ptr.vmem [resolvable:$true] %s1160_s27 }
  0x2b   : > { %p1384_p1 = scmp.lt.s32.totalorder %s1161_s27, %s1382_s21 }
  0x2d   : > { %672 = vrot.lane.b32.xlu1 %v313_v0, %s1459_s29 }
  0x2e   : > { %676 = vrot.lane.b32.xlu0 %v314_v2, %s1459_s29 }
  0x31   : > { %767 = vrot.lane.b32.xlu1 %v314_v2, %s1460_s7 }
  0x32   : > { %765 = vrot.lane.b32.xlu0 %v316_v3, %s1460_s7 }
  0x35   : > { %856 = vrot.lane.b32.xlu1 %v316_v3, %s1461_s8 }
  0x36   : > { %763 = vrot.lane.b32.xlu0 %v313_v0, %s1460_s7 }
  0x39   : > { %854 = vrot.lane.b32.xlu1 %v313_v0, %s1461_s8 }
  0x3a   : > { %858 = vrot.lane.b32.xlu0 %v314_v2, %s1461_s8  ;;  %s1158_s8 = scalar_lea.hbm %s1674_s5, %s1307_s24 }
  0x3d   : > { %949 = vrot.lane.b32.xlu1 %v314_v2, %s1462_s9 }
  0x3e   : > { %947 = vrot.lane.b32.xlu0 %v316_v3, %s1462_s9 }
  0x41   : > { %1038 = vrot.lane.b32.xlu1 %v316_v3, %s1464_s10 }
  0x42   : > { %945 = vrot.lane.b32.xlu0 %v313_v0, %s1462_s9  ;;  %s1144_s9 = scalar_lea.sflag [#allocation3], %s283_s16 }
  0x45   : > { %1036 = vrot.lane.b32.xlu1 %v313_v0, %s1464_s10 }
  0x46   : > { %1040 = vrot.lane.b32.xlu0 %v314_v2, %s1464_s10  ;;  %s1377_s10 = scalar_lea.vmem %s1161_s27, 256 }
  0x47   : > { %p1378_p12 = scmp.ne.s32.totalorder %s1161_s27, %s1377_s10  ;;  %p1385_p2 = scmp.lt.s32.totalorder %s1383_s12, %s1377_s10 }
  0x49   : > { %1136 = vperm.xlu1 %1375, %v1133_v6   ;;  %p1379_p13 = pnand %p1378_p12, %p1536_p4  ;;  %p1386_p3 = por %p1385_p2, %p1384_p1 }
  0x4a   : > { %1128 = vperm.xlu0 %1374, %v1125_v7  }
  0x4b   : > { %p1380_p0 = pneg %p1379_p13 }
  0x4d   : > { %p1387_p5 = pnand %p1386_p3, %p1380_p0 }
  0x8b   : > { %v322_v8 = vpop.permute.xlu1 %321 }
  0x8c   : > { %v326_v9 = vpop.permute.xlu0 %325 }
  0x8f   : > { %v491_v10 = vpop.permute.xlu1 %490 }
  0x90   : > { %v495_v11 = vpop.permute.xlu0 %494 }
  0x93   : > { %v493_v12 = vpop.permute.xlu1 %492 }
  0x94   : > { %v324_v13 = vpop.permute.xlu0 %323  ;;  %v498_v17 = vsel %vm496_vm3, %v493_v12, %v495_v11  ;;  %v497_v19 = vsel %vm496_vm3, %v491_v10, %v493_v12 }
  0x95   : > { %v329_v14 = vsel %vm327_vm2, %v324_v13, %v326_v9  ;;  %v328_v15 = vsel %vm327_vm2, %v322_v8, %v324_v13 }
  0x96   : > { %1265 = vmatprep.subr.msk.mxu0 %vm334_vm0, %v329_v14 }
  0x97   : > { %v586_v18 = vpop.permute.xlu1 %585  ;;  %1266 = vmatpush1.msk.msra.mxu0 %vm334_vm0, %v328_v15 }
  0x98   : > { %1272 = vmatprep.subr.msk.mxu0 %vm334_vm0, %v498_v17  ;;  %v584_v20 = vpop.permute.xlu0 %583  ;;  %1267 = vmatmul.mubr.msk.f32.vlgmr.msra.gmra.mxu0 %vm330_vm1, %v1264_v16 }
  0x99   : > { %v589_v21 = vsel %vm587_vm4, %v584_v20, %v586_v18  ;;  %1273 = vmatpush1.msk.msra.mxu0 %vm334_vm0, %v497_v19  ;;  %570 = vmatprep.mubr.f32.mxu0 %v1455_v1 }
  0x9a   : > { %1276 = vmatprep.subr.msk.mxu1 %vm334_vm0, %v589_v21 }
  0x9b   : > { %v675_v23 = vpop.permute.xlu1 %674 }
  0x9c   : > { %v582_v24 = vpop.permute.xlu0 %581  ;;  %1274 = vmatmul.mubr.msk.f32.vlgmr.msra.gmra.mxu0 %vm330_vm1, %v1271_v22 }
  0x9d   : > { %v588_v26 = vsel %vm587_vm4, %v582_v24, %v584_v20  ;;  %752 = vmatprep.mubr.f32.mxu0 %v1455_v1 }
  0x9e   : > { %1277 = vmatpush1.msk.msra.mxu1 %vm334_vm0, %v588_v26 }
  0x9f   : > { %v673_v27 = vpop.permute.xlu1 %672  ;;  %1278 = vmatmul.mubr.msk.f32.vlgmr.msra.gmra.mxu1 %vm330_vm1, %v1275_v25 }
  0xa0   : > { %v677_v28 = vpop.permute.xlu0 %676  ;;  %843 = vmatprep.mubr.f32.mxu1 %v1455_v1  ;;  %v679_v31 = vsel %vm678_vm5, %v673_v27, %v675_v23 }
  0xa1   : > { %v680_v29 = vsel %vm678_vm5, %v675_v23, %v677_v28 }
  0xa2   : > { %1280 = vmatprep.subr.msk.mxu0 %vm334_vm0, %v680_v29 }
  0xa3   : > { %v768_v32 = vpop.permute.xlu1 %767  ;;  %1281 = vmatpush1.msk.msra.mxu0 %vm334_vm0, %v679_v31 }
  0xa4   : > { %v766_v33 = vpop.permute.xlu0 %765  ;;  %1282 = vmatmul.mubr.msk.f32.vlgmr.msra.gmra.mxu0 %vm330_vm1, %v1279_v30 }
  0xa5   : > { %v771_v34 = vsel %vm769_vm6, %v766_v33, %v768_v32  ;;  %934 = vmatprep.mubr.f32.mxu0 %v1455_v1 }
  0xa6   : > { %1284 = vmatprep.subr.msk.mxu1 %vm334_vm0, %v771_v34 }
  0xa7   : > { %v857_v35 = vpop.permute.xlu1 %856 }
  0xa8   : > { %v764_v36 = vpop.permute.xlu0 %763 }
  0xa9   : > { %v770_v38 = vsel %vm769_vm6, %v764_v36, %v766_v33 }
  0xaa   : > { %1285 = vmatpush1.msk.msra.mxu1 %vm334_vm0, %v770_v38 }
  0xab   : > { %v855_v39 = vpop.permute.xlu1 %854  ;;  %1286 = vmatmul.mubr.msk.f32.vlgmr.msra.gmra.mxu1 %vm330_vm1, %v1283_v37 }
  0xac   : > { %v859_v40 = vpop.permute.xlu0 %858  ;;  %1025 = vmatprep.mubr.f32.mxu1 %v1455_v1  ;;  %v861_v43 = vsel %vm860_vm7, %v855_v39, %v857_v35 }
  0xad   : > { %v862_v41 = vsel %vm860_vm7, %v857_v35, %v859_v40 }
  0xae   : > { %1288 = vmatprep.subr.msk.mxu0 %vm334_vm0, %v862_v41 }
  0xaf   : > { %v950_v44 = vpop.permute.xlu1 %949  ;;  %1289 = vmatpush1.msk.msra.mxu0 %vm334_vm0, %v861_v43 }
  0xb0   : > { %v948_v45 = vpop.permute.xlu0 %947  ;;  %1290 = vmatmul.mubr.msk.f32.vlgmr.msra.gmra.mxu0 %vm330_vm1, %v1287_v42 }
  0xb1   : > { %v953_v46 = vsel %vm951_vm8, %v948_v45, %v950_v44  ;;  %1116 = vmatprep.mubr.f32.mxu0 %v1455_v1 }
  0xb2   : > { %1292 = vmatprep.subr.msk.mxu1 %vm334_vm0, %v953_v46 }
  0xb3   : > { %v1039_v47 = vpop.permute.xlu1 %1038 }
  0xb4   : > { %v946_v48 = vpop.permute.xlu0 %945 }
  0xb5   : > { %v952_v50 = vsel %vm951_vm8, %v946_v48, %v948_v45 }
  0xb6   : > { %1293 = vmatpush1.msk.msra.mxu1 %vm334_vm0, %v952_v50 }
  0xb7   : > { %v1037_v51 = vpop.permute.xlu1 %1036  ;;  %1294 = vmatmul.mubr.msk.f32.vlgmr.msra.gmra.mxu1 %vm330_vm1, %v1291_v49 }
  0xb8   : > { %v1041_v52 = vpop.permute.xlu0 %1040  ;;  %v1043_v55 = vsel %vm1042_vm9, %v1037_v51, %v1039_v47 }
  0xb9   : > { %v1044_v53 = vsel %vm1042_vm9, %v1039_v47, %v1041_v52 }
  0xba   : > { %1296 = vmatprep.subr.msk.mxu0 %vm334_vm0, %v1044_v53 }
  0xbb   : > { %1297 = vmatpush1.msk.msra.mxu0 %vm334_vm0, %v1043_v55 }
  0xbc   : > { %1298 = vmatmul.mubr.msk.f32.vlgmr.msra.gmra.mxu0 %vm330_vm1, %v1295_v54 }
  0xc4   : > { %v1137_v26 = vpop.permute.xlu1 %1136 }
  0xc5   : > { %v1129_v22 = vpop.permute.xlu0 %1128 }
  0xdd   : > { %v483_v58 = vpop.f32.mrf.mxu1 }
  0xdf   : > { %v485_v59 = vpop.f32.mrf.mxu1 }
 0x158   : > { %v405_v56 = vpop.f32.mrf.mxu0 }
 0x159   : > { %v484_v61 = vadd.f32 %v483_v58, %v405_v56 }
 0x15a   : > { %v407_v57 = vpop.f32.mrf.mxu0 }
 0x15b   : > { %v486_v62 = vadd.f32 %v485_v59, %v407_v57 }
 0x15c   : > { %v572_v60 = vpop.f32.mrf.mxu0 }
 0x15d   : > { %v577_v1 = vadd.f32 %v572_v60, %v484_v61 }
 0x15e   : > { %v574_v63 = vpop.f32.mrf.mxu0 }
 0x15f   : > { %v663_v0 = vpop.f32.mrf.mxu1  ;;  %v578_v2 = vadd.f32 %v574_v63, %v486_v62 }
 0x160   : > { %v668_v5 = vadd.f32 %v663_v0, %v577_v1 }
 0x161   : > { %v665_v3 = vpop.f32.mrf.mxu1 }
 0x162   : > { %v669_v6 = vadd.f32 %v665_v3, %v578_v2 }
 0x164   : > { %v754_v4 = vpop.f32.mrf.mxu0 }
 0x165   : > { %v759_v9 = vadd.f32 %v754_v4, %v668_v5 }
 0x166   : > { %v756_v7 = vpop.f32.mrf.mxu0 }
 0x167   : > { %v760_v10 = vadd.f32 %v756_v7, %v669_v6 }
 0x16b   : > { %v845_v8 = vpop.f32.mrf.mxu1 }
 0x16c   : > { %v850_v13 = vadd.f32 %v845_v8, %v759_v9 }
 0x16d   : > { %v847_v11 = vpop.f32.mrf.mxu1 }
 0x16e   : > { %v851_v14 = vadd.f32 %v847_v11, %v760_v10 }
 0x170   : > { %v936_v12 = vpop.f32.mrf.mxu0 }
 0x171   : > { %v941_v16 = vadd.f32 %v936_v12, %v850_v13 }
 0x172   : > { %v938_v15 = vpop.f32.mrf.mxu0 }
 0x173   : > { %v942_v18 = vadd.f32 %v938_v15, %v851_v14 }
 0x177   : > { %v1027_v17 = vpop.f32.mrf.mxu1 }
 0x178   : > { %v1032_v20 = vadd.f32 %v1027_v17, %v941_v16 }
 0x179   : > { %v1029_v19 = vpop.f32.mrf.mxu1 }
 0x17a   : > { %v1033_v23 = vadd.f32 %v1029_v19, %v942_v18 }
 0x17c   : > { %v1118_v21 = vpop.f32.mrf.mxu0 }
 0x17d   : > { %v1123_v24 = vadd.f32 %v1118_v21, %v1032_v20 }
 0x17e   : > { %v1120_v25 = vpop.f32.mrf.mxu0 }
 0x17f   : > { %v1124_v27 = vadd.f32 %v1120_v25, %v1033_v23  ;;  %v1131_v28 = vmul.f32 %v1129_v22, %v1123_v24 }
 0x181   : > { %v1132_v29 = vmul.f32 %v1129_v22, %v1124_v27  ;;  %v1139_v30 = vadd.f32 %v1137_v26, %v1131_v28 }
 0x183   : > { %v1140_v31 = vadd.f32 %v1137_v26, %v1132_v29  ;;  %1141 = vst [vmem:[%s285_s25] sm:$0xff] %v1139_v30 }
 0x185   : > { %1142 = vst [vmem:[%s285_s25 + $0x8] sm:$0xff] %v1140_v31 }
 0x186   : > { %1390 = shalt.err (!%p1387_p5)
}
 0x187   : > { %s1391_s13 = scalar_lea.hbm %s1158_s8, 256  ;;  %s1395_s16 = scalar_lea.hbm %s1674_s5, 512 }
 0x188   : > { %p1392_p6 = scmp.ne.s32.totalorder %s1158_s8, %s1391_s13  ;;  %p1396_p10 = scmp.lt.s32.totalorder %s1158_s8, %s1674_s5 }
 0x189   : > { %p1397_p11 = scmp.lt.s32.totalorder %s1395_s16, %s1391_s13 }
 0x18a   : > { %p1393_p7 = pnand %p1392_p6, %p1536_p4 }
 0x18b   : > { %p1398_p12 = por %p1397_p11, %p1396_p10 }
 0x18c   : > { %p1394_p9 = pneg %p1393_p7 }
 0x18e   : > { %p1399_p13 = pnand %p1398_p12, %p1394_p9 }
 0x190   : > { %1402 = shalt.err (!%p1399_p13)
}
 0x191   : > { %1309 = dma.vmem_to_hbm [thread:$0]  (%p1536_p4), %s1161_s27, 256, %s1158_s8, %s1144_s9  }
 0x192 PF: > { %p1315_p0 = scmp.ge.s32.totalorder %s1453_s23, 2  ;;  %s1172_s25 = sand.u32 1, %s1433_s18  }
 0x193   : > { %s1173_s29 = scalar_lea.sflag [#allocation3], %s1172_s25 }
 0x194   : > { %p1312_p1 = pnand %p1315_p0, %p1543_p8 }
 0x196   : > { %p1313_p2 = pneg %p1312_p1 }
 0x198   : > { %1428 = dma.done.wait (%p1313_p2), %s1173_s29, 256  }
 0x199   : > { %1430 = vsyncadd (%p1313_p2), %s1173_s29, 4294967040  ;;  %s18_s23 = sadd.s32 1, %s1453_s23   ;;  %s1677_s18 = smov %s1437_s19 }
 0x19a   : > { %p15_p3 = scmp.ge.s32.totalorder %s18_s23, 4   ;;  %s1678_s19 = smov %s1441_s20 }
 0x19b   : > { %s1679_s20 = smov %s1549_s6  ;;  %s1680_s21 = smov %s1449_s22 }
 0x19c   : > { %s1681_s22 = smov %s1683_s26  ;;  %17 = sbr.rel (!%p15_p3) target bundleno = 4 (0x4), region = 86 }
 0x1a1   :  { %1178 = vsyncpa [#allocation3], 1 }
 0x1a2   :  { %1180 = vsyncpa [#allocation3 + $0x1], 1 }

</bundles_post_ra>
